<compile_context>
chip_gen: v7x
topology: tpu7x:2x2x1
jax: 0.10.0
libtpu: 0.0.40
codegen_flags: <defaults>
</compile_context>

<pallas_src>
import jax
import jax.numpy as jnp
from jax.experimental import pallas as pl
from jax.experimental.pallas import tpu as pltpu

HIDDEN_SIZE = 64
INPUT_SIZE = 1
NUM_CLASSES = 3
NUM_LAYERS = 1      # single layer -> dropout inside nn.LSTM is inactive
LANE = 128
SUBLANE = 8


def lstm_fc_kernel(xp_ref, w_hh_ref, w_fc_ref, b_fc_ref, out_ref):
    """Whole forward pass in one kernel invocation (all operands in VMEM).

    xp_ref  : (T, Bp, 4H)  precomputed x_t @ W_ih^T + (b_ih + b_hh), gates [i,f,o,g]
    w_hh_ref: (H, 4H)      packed recurrent weights, gates [i,f,o,g]
    w_fc_ref: (H, Cp)      classifier weight (transposed, lane-padded to 128)
    b_fc_ref: (1, Cp)      classifier bias (lane-padded)
    out_ref : (Bp, Cp)     logits (padded; wrapper slices to (B, C))
    """
    T, Bp, _ = xp_ref.shape
    H = w_hh_ref.shape[0]

    w_hh = w_hh_ref[...]                       # (H, 4H), resident across the loop

    h0 = jnp.zeros((Bp, H), jnp.float32)
    c0 = jnp.zeros((Bp, H), jnp.float32)

    def step(t, carry):
        h, c = carry
        # One fused recurrent matmul per step: (Bp, H) x (H, 4H).
        gates = xp_ref[t] + jnp.dot(h, w_hh, preferred_element_type=jnp.float32)
        s = jax.nn.sigmoid(gates)              # bulk EUP call; g lanes discarded
        g = jnp.tanh(gates[:, 3 * H:4 * H])
        i_g = s[:, 0:H]
        f_g = s[:, H:2 * H]
        o_g = s[:, 2 * H:3 * H]
        c_new = f_g * c + i_g * g
        h_new = o_g * jnp.tanh(c_new)
        return (h_new, c_new)

    # T is static (=8); full unroll gives the LLO scheduler cross-step visibility.
    h_last, _ = jax.lax.fori_loop(0, T, step, (h0, c0), unroll=True)

    # out = h_last @ W_fc^T + b_fc (lane-padded to a full vreg width)
    out_ref[...] = (jnp.dot(h_last, w_fc_ref[...],
                            preferred_element_type=jnp.float32)
                    + b_fc_ref[...])


def pack_params(params):
    """One-time repack of PyTorch-layout parameters into kernel-friendly layouts."""
    H, I, C = HIDDEN_SIZE, INPUT_SIZE, NUM_CLASSES
    Cp = LANE  # pad classifier output lanes to one full vreg width

    w_ih, w_hh = params["w_ih"], params["w_hh"]
    b = params["b_ih"] + params["b_hh"]
    w_fc, b_fc = params["w_fc"], params["b_fc"]

    # PyTorch gate order is [i, f, g, o]; reorder to [i, f, o, g] so the sigmoid
    # gates are contiguous and tanh applies only to the trailing H lanes.
    perm = jnp.array([0, 1, 3, 2])
    # weight_ih_l0: (4H, I) -> (4, H, I) -> reorder -> (I, 4, H) -> (I, 4H)
    w_ih_p = jnp.transpose(w_ih.reshape(4, H, I)[perm], (2, 0, 1)).reshape(I, 4 * H)
    # weight_hh_l0: (4H, H) -> (4, H_out, H_in) -> reorder -> (H_in, 4, H_out) -> (H, 4H)
    w_hh_p = jnp.transpose(w_hh.reshape(4, H, H)[perm], (2, 0, 1)).reshape(H, 4 * H)
    # combined bias: (4H,) -> (1, 4H) in [i, f, o, g] order
    b_p = b.reshape(4, H)[perm].reshape(1, 4 * H)

    # fc: (C, H) -> (H, Cp), bias -> (1, Cp); zero-pad lanes C..Cp.
    w_fc_p = jnp.zeros((H, Cp), jnp.float32).at[:, :C].set(w_fc.T)
    b_fc_p = jnp.zeros((1, Cp), jnp.float32).at[:, :C].set(b_fc)

    return {
        "w_ih_p": w_ih_p.astype(jnp.float32),
        "w_hh_p": w_hh_p.astype(jnp.float32),
        "b_p": b_p.astype(jnp.float32),
        "w_fc_p": w_fc_p,
        "b_fc_p": b_fc_p,
    }


@jax.jit
def lstm_classifier_forward(x, packed):
    """x: (B, T, I) float32 -> logits (B, NUM_CLASSES) float32."""
    B, T, I = x.shape
    C = NUM_CLASSES
    Bp = ((B + SUBLANE - 1) // SUBLANE) * SUBLANE   # pad batch to full sublanes

    # Hoist the input projection out of the recurrence: one (T,B,I)x(I,4H)
    # matmul (+ packed bias), producing a lane-dense (T, Bp, 4H) kernel input.
    x_tbi = jnp.transpose(x, (1, 0, 2)).astype(jnp.float32)              # (T, B, I)
    x_proj = jnp.einsum("tbi,ig->tbg", x_tbi, packed["w_ih_p"]) + packed["b_p"]
    x_proj = jnp.pad(x_proj, ((0, 0), (0, Bp - B), (0, 0)))              # (T, Bp, 4H)

    # TODO(synk): for large batches on v7x, add a batch-tile grid axis with
    # dimension_semantics=("parallel",) to use both TensorCores.
    vmem = pl.BlockSpec(memory_space=pltpu.MemorySpace.VMEM)
    out_p = pl.pallas_call(
        lstm_fc_kernel,
        out_shape=jax.ShapeDtypeStruct((Bp, LANE), jnp.float32),
        in_specs=[vmem] * 4,
        out_specs=vmem,
    )(x_proj, packed["w_hh_p"], packed["w_fc_p"], packed["b_fc_p"])
    return out_p[:B, :C]


def init_params(key):
    """Deterministic parameter init matching PyTorch LSTM/Linear shapes."""
    H, I, C = HIDDEN_SIZE, INPUT_SIZE, NUM_CLASSES
    k = 1.0 / jnp.sqrt(jnp.float32(H))
    ks = jax.random.split(key, 6)
    u = lambda kk, shape: jax.random.uniform(kk, shape, jnp.float32, -k, k)
    return {
        "w_ih": u(ks[0], (4 * H, I)),   # weight_ih_l0
        "w_hh": u(ks[1], (4 * H, H)),   # weight_hh_l0
        "b_ih": u(ks[2], (4 * H,)),     # bias_ih_l0
        "b_hh": u(ks[3], (4 * H,)),     # bias_hh_l0
        "w_fc": u(ks[4], (C, H)),       # fc.weight
        "b_fc": u(ks[5], (C,)),         # fc.bias
    }


def reference_forward(x, params):
    """Pure-JAX reference replicating torch.nn.LSTM + Linear semantics."""
    H = HIDDEN_SIZE
    w_ih, w_hh = params["w_ih"], params["w_hh"]
    b = params["b_ih"] + params["b_hh"]
    B, T, _ = x.shape
    h = jnp.zeros((B, H), jnp.float32)
    c = jnp.zeros((B, H), jnp.float32)
    for t in range(T):
        gates = x[:, t, :] @ w_ih.T + h @ w_hh.T + b
        i_g = jax.nn.sigmoid(gates[:, 0:H])
        f_g = jax.nn.sigmoid(gates[:, H:2 * H])
        g_g = jnp.tanh(gates[:, 2 * H:3 * H])
        o_g = jax.nn.sigmoid(gates[:, 3 * H:4 * H])
        c = f_g * c + i_g * g_g
        h = o_g * jnp.tanh(c)
    return h @ params["w_fc"].T + params["b_fc"]


if __name__ == "__main__":
    key = jax.random.PRNGKey(0)
    k_param, k_x = jax.random.split(key)

    batch, seq_len = 2, 8
    x = jax.random.normal(k_x, (batch, seq_len, INPUT_SIZE), jnp.float32)
    params = init_params(k_param)
    packed = pack_params(params)        # one-time repack, outside the call path

    logits = jax.block_until_ready(lstm_classifier_forward(x, packed))
    ref = reference_forward(x, params)

    assert logits.shape == (batch, NUM_CLASSES)
    assert jnp.allclose(logits, ref, atol=1e-4, rtol=1e-4), (logits, ref)
    print("KERNEL_OK")
</pallas_src>

<mosaic_0001>
module attributes {stable_mosaic.version = 11 : i64} {
  func.func @lstm_fc_kernel(%arg0: memref<8x8x256xf32, #tpu.memory_space<vmem>>, %arg1: memref<64x256xf32, #tpu.memory_space<vmem>>, %arg2: memref<64x128xf32, #tpu.memory_space<vmem>>, %arg3: memref<1x128xf32, #tpu.memory_space<vmem>>, %arg4: memref<8x128xf32, #tpu.memory_space<vmem>>) attributes {dimension_semantics = [], scalar_prefetch = 0 : i64, scratch_operands = 0 : i64, tpu.core_type = #tpu.core_type<tc>} {
    %c0 = arith.constant 0 : index
    %c0_0 = arith.constant 0 : index
    %0 = vector.load %arg1[%c0, %c0_0] : memref<64x256xf32, #tpu.memory_space<vmem>>, vector<64x256xf32>
    %cst = arith.constant 0.000000e+00 : f32
    %1 = vector.broadcast %cst : f32 to vector<8x64xf32>
    %cst_1 = arith.constant 0.000000e+00 : f32
    %2 = vector.broadcast %cst_1 : f32 to vector<8x64xf32>
    %c0_i32 = arith.constant 0 : i32
    %3 = arith.index_cast %c0_i32 : i32 to index
    %c0_2 = arith.constant 0 : index
    %c0_3 = arith.constant 0 : index
    %4 = vector.load %arg0[%3, %c0_2, %c0_3] : memref<8x8x256xf32, #tpu.memory_space<vmem>>, vector<1x8x256xf32>
    %5 = vector.shape_cast %4 : vector<1x8x256xf32> to vector<8x256xf32>
    %cst_4 = arith.constant dense<0.000000e+00> : vector<8x256xf32>
    %6 = tpu.matmul %1, %0, %cst_4 {dimension_numbers = #tpu.dot_dimension_numbers<[1], [0], [0], [1], [0, 0, 1, 1], [], []>} : vector<8x64xf32>, vector<64x256xf32>, vector<8x256xf32> -> vector<8x256xf32>
    %7 = arith.addf %5, %6 : vector<8x256xf32>
    %8 = arith.negf %7 : vector<8x256xf32>
    %9 = math.exp %8 : vector<8x256xf32>
    %cst_5 = arith.constant 1.000000e+00 : f32
    %10 = vector.broadcast %cst_5 : f32 to vector<8x256xf32>
    %11 = arith.addf %10, %9 : vector<8x256xf32>
    %12 = arith.divf %10, %11 : vector<8x256xf32>
    %13 = vector.extract_strided_slice %7 {offsets = [0, 192], sizes = [8, 64], strides = [1, 1]} : vector<8x256xf32> to vector<8x64xf32>
    %14 = math.tanh %13 : vector<8x64xf32>
    %15 = vector.extract_strided_slice %12 {offsets = [0, 0], sizes = [8, 64], strides = [1, 1]} : vector<8x256xf32> to vector<8x64xf32>
    %16 = vector.extract_strided_slice %12 {offsets = [0, 64], sizes = [8, 64], strides = [1, 1]} : vector<8x256xf32> to vector<8x64xf32>
    %17 = vector.extract_strided_slice %12 {offsets = [0, 128], sizes = [8, 64], strides = [1, 1]} : vector<8x256xf32> to vector<8x64xf32>
    %18 = arith.mulf %16, %2 : vector<8x64xf32>
    %19 = arith.mulf %15, %14 : vector<8x64xf32>
    %20 = arith.addf %18, %19 : vector<8x64xf32>
    %21 = math.tanh %20 : vector<8x64xf32>
    %22 = arith.mulf %17, %21 : vector<8x64xf32>
    %c1_i32 = arith.constant 1 : i32
    %23 = arith.index_cast %c1_i32 : i32 to index
    %c0_6 = arith.constant 0 : index
    %c0_7 = arith.constant 0 : index
    %24 = vector.load %arg0[%23, %c0_6, %c0_7] : memref<8x8x256xf32, #tpu.memory_space<vmem>>, vector<1x8x256xf32>
    %25 = vector.shape_cast %24 : vector<1x8x256xf32> to vector<8x256xf32>
    %cst_8 = arith.constant dense<0.000000e+00> : vector<8x256xf32>
    %26 = tpu.matmul %22, %0, %cst_8 {dimension_numbers = #tpu.dot_dimension_numbers<[1], [0], [0], [1], [0, 0, 1, 1], [], []>} : vector<8x64xf32>, vector<64x256xf32>, vector<8x256xf32> -> vector<8x256xf32>
    %27 = arith.addf %25, %26 : vector<8x256xf32>
    %28 = arith.negf %27 : vector<8x256xf32>
    %29 = math.exp %28 : vector<8x256xf32>
    %cst_9 = arith.constant 1.000000e+00 : f32
    %30 = vector.broadcast %cst_9 : f32 to vector<8x256xf32>
    %31 = arith.addf %30, %29 : vector<8x256xf32>
    %32 = arith.divf %30, %31 : vector<8x256xf32>
    %33 = vector.extract_strided_slice %27 {offsets = [0, 192], sizes = [8, 64], strides = [1, 1]} : vector<8x256xf32> to vector<8x64xf32>
    %34 = math.tanh %33 : vector<8x64xf32>
    %35 = vector.extract_strided_slice %32 {offsets = [0, 0], sizes = [8, 64], strides = [1, 1]} : vector<8x256xf32> to vector<8x64xf32>
    %36 = vector.extract_strided_slice %32 {offsets = [0, 64], sizes = [8, 64], strides = [1, 1]} : vector<8x256xf32> to vector<8x64xf32>
    %37 = vector.extract_strided_slice %32 {offsets = [0, 128], sizes = [8, 64], strides = [1, 1]} : vector<8x256xf32> to vector<8x64xf32>
    %38 = arith.mulf %36, %20 : vector<8x64xf32>
    %39 = arith.mulf %35, %34 : vector<8x64xf32>
    %40 = arith.addf %38, %39 : vector<8x64xf32>
    %41 = math.tanh %40 : vector<8x64xf32>
    %42 = arith.mulf %37, %41 : vector<8x64xf32>
    %c2_i32 = arith.constant 2 : i32
    %43 = arith.index_cast %c2_i32 : i32 to index
    %c0_10 = arith.constant 0 : index
    %c0_11 = arith.constant 0 : index
    %44 = vector.load %arg0[%43, %c0_10, %c0_11] : memref<8x8x256xf32, #tpu.memory_space<vmem>>, vector<1x8x256xf32>
    %45 = vector.shape_cast %44 : vector<1x8x256xf32> to vector<8x256xf32>
    %cst_12 = arith.constant dense<0.000000e+00> : vector<8x256xf32>
    %46 = tpu.matmul %42, %0, %cst_12 {dimension_numbers = #tpu.dot_dimension_numbers<[1], [0], [0], [1], [0, 0, 1, 1], [], []>} : vector<8x64xf32>, vector<64x256xf32>, vector<8x256xf32> -> vector<8x256xf32>
    %47 = arith.addf %45, %46 : vector<8x256xf32>
    %48 = arith.negf %47 : vector<8x256xf32>
    %49 = math.exp %48 : vector<8x256xf32>
    %cst_13 = arith.constant 1.000000e+00 : f32
    %50 = vector.broadcast %cst_13 : f32 to vector<8x256xf32>
    %51 = arith.addf %50, %49 : vector<8x256xf32>
    %52 = arith.divf %50, %51 : vector<8x256xf32>
    %53 = vector.extract_strided_slice %47 {offsets = [0, 192], sizes = [8, 64], strides = [1, 1]} : vector<8x256xf32> to vector<8x64xf32>
    %54 = math.tanh %53 : vector<8x64xf32>
    %55 = vector.extract_strided_slice %52 {offsets = [0, 0], sizes = [8, 64], strides = [1, 1]} : vector<8x256xf32> to vector<8x64xf32>
    %56 = vector.extract_strided_slice %52 {offsets = [0, 64], sizes = [8, 64], strides = [1, 1]} : vector<8x256xf32> to vector<8x64xf32>
    %57 = vector.extract_strided_slice %52 {offsets = [0, 128], sizes = [8, 64], strides = [1, 1]} : vector<8x256xf32> to vector<8x64xf32>
    %58 = arith.mulf %56, %40 : vector<8x64xf32>
    %59 = arith.mulf %55, %54 : vector<8x64xf32>
    %60 = arith.addf %58, %59 : vector<8x64xf32>
    %61 = math.tanh %60 : vector<8x64xf32>
    %62 = arith.mulf %57, %61 : vector<8x64xf32>
    %c3_i32 = arith.constant 3 : i32
    %63 = arith.index_cast %c3_i32 : i32 to index
    %c0_14 = arith.constant 0 : index
    %c0_15 = arith.constant 0 : index
    %64 = vector.load %arg0[%63, %c0_14, %c0_15] : memref<8x8x256xf32, #tpu.memory_space<vmem>>, vector<1x8x256xf32>
    %65 = vector.shape_cast %64 : vector<1x8x256xf32> to vector<8x256xf32>
    %cst_16 = arith.constant dense<0.000000e+00> : vector<8x256xf32>
    %66 = tpu.matmul %62, %0, %cst_16 {dimension_numbers = #tpu.dot_dimension_numbers<[1], [0], [0], [1], [0, 0, 1, 1], [], []>} : vector<8x64xf32>, vector<64x256xf32>, vector<8x256xf32> -> vector<8x256xf32>
    %67 = arith.addf %65, %66 : vector<8x256xf32>
    %68 = arith.negf %67 : vector<8x256xf32>
    %69 = math.exp %68 : vector<8x256xf32>
    %cst_17 = arith.constant 1.000000e+00 : f32
    %70 = vector.broadcast %cst_17 : f32 to vector<8x256xf32>
    %71 = arith.addf %70, %69 : vector<8x256xf32>
    %72 = arith.divf %70, %71 : vector<8x256xf32>
    %73 = vector.extract_strided_slice %67 {offsets = [0, 192], sizes = [8, 64], strides = [1, 1]} : vector<8x256xf32> to vector<8x64xf32>
    %74 = math.tanh %73 : vector<8x64xf32>
    %75 = vector.extract_strided_slice %72 {offsets = [0, 0], sizes = [8, 64], strides = [1, 1]} : vector<8x256xf32> to vector<8x64xf32>
    %76 = vector.extract_strided_slice %72 {offsets = [0, 64], sizes = [8, 64], strides = [1, 1]} : vector<8x256xf32> to vector<8x64xf32>
    %77 = vector.extract_strided_slice %72 {offsets = [0, 128], sizes = [8, 64], strides = [1, 1]} : vector<8x256xf32> to vector<8x64xf32>
    %78 = arith.mulf %76, %60 : vector<8x64xf32>
    %79 = arith.mulf %75, %74 : vector<8x64xf32>
    %80 = arith.addf %78, %79 : vector<8x64xf32>
    %81 = math.tanh %80 : vector<8x64xf32>
    %82 = arith.mulf %77, %81 : vector<8x64xf32>
    %c4_i32 = arith.constant 4 : i32
    %83 = arith.index_cast %c4_i32 : i32 to index
    %c0_18 = arith.constant 0 : index
    %c0_19 = arith.constant 0 : index
    %84 = vector.load %arg0[%83, %c0_18, %c0_19] : memref<8x8x256xf32, #tpu.memory_space<vmem>>, vector<1x8x256xf32>
    %85 = vector.shape_cast %84 : vector<1x8x256xf32> to vector<8x256xf32>
    %cst_20 = arith.constant dense<0.000000e+00> : vector<8x256xf32>
    %86 = tpu.matmul %82, %0, %cst_20 {dimension_numbers = #tpu.dot_dimension_numbers<[1], [0], [0], [1], [0, 0, 1, 1], [], []>} : vector<8x64xf32>, vector<64x256xf32>, vector<8x256xf32> -> vector<8x256xf32>
    %87 = arith.addf %85, %86 : vector<8x256xf32>
    %88 = arith.negf %87 : vector<8x256xf32>
    %89 = math.exp %88 : vector<8x256xf32>
    %cst_21 = arith.constant 1.000000e+00 : f32
    %90 = vector.broadcast %cst_21 : f32 to vector<8x256xf32>
    %91 = arith.addf %90, %89 : vector<8x256xf32>
    %92 = arith.divf %90, %91 : vector<8x256xf32>
    %93 = vector.extract_strided_slice %87 {offsets = [0, 192], sizes = [8, 64], strides = [1, 1]} : vector<8x256xf32> to vector<8x64xf32>
    %94 = math.tanh %93 : vector<8x64xf32>
    %95 = vector.extract_strided_slice %92 {offsets = [0, 0], sizes = [8, 64], strides = [1, 1]} : vector<8x256xf32> to vector<8x64xf32>
    %96 = vector.extract_strided_slice %92 {offsets = [0, 64], sizes = [8, 64], strides = [1, 1]} : vector<8x256xf32> to vector<8x64xf32>
    %97 = vector.extract_strided_slice %92 {offsets = [0, 128], sizes = [8, 64], strides = [1, 1]} : vector<8x256xf32> to vector<8x64xf32>
    %98 = arith.mulf %96, %80 : vector<8x64xf32>
    %99 = arith.mulf %95, %94 : vector<8x64xf32>
    %100 = arith.addf %98, %99 : vector<8x64xf32>
    %101 = math.tanh %100 : vector<8x64xf32>
    %102 = arith.mulf %97, %101 : vector<8x64xf32>
    %c5_i32 = arith.constant 5 : i32
    %103 = arith.index_cast %c5_i32 : i32 to index
    %c0_22 = arith.constant 0 : index
    %c0_23 = arith.constant 0 : index
    %104 = vector.load %arg0[%103, %c0_22, %c0_23] : memref<8x8x256xf32, #tpu.memory_space<vmem>>, vector<1x8x256xf32>
    %105 = vector.shape_cast %104 : vector<1x8x256xf32> to vector<8x256xf32>
    %cst_24 = arith.constant dense<0.000000e+00> : vector<8x256xf32>
    %106 = tpu.matmul %102, %0, %cst_24 {dimension_numbers = #tpu.dot_dimension_numbers<[1], [0], [0], [1], [0, 0, 1, 1], [], []>} : vector<8x64xf32>, vector<64x256xf32>, vector<8x256xf32> -> vector<8x256xf32>
    %107 = arith.addf %105, %106 : vector<8x256xf32>
    %108 = arith.negf %107 : vector<8x256xf32>
    %109 = math.exp %108 : vector<8x256xf32>
    %cst_25 = arith.constant 1.000000e+00 : f32
    %110 = vector.broadcast %cst_25 : f32 to vector<8x256xf32>
    %111 = arith.addf %110, %109 : vector<8x256xf32>
    %112 = arith.divf %110, %111 : vector<8x256xf32>
    %113 = vector.extract_strided_slice %107 {offsets = [0, 192], sizes = [8, 64], strides = [1, 1]} : vector<8x256xf32> to vector<8x64xf32>
    %114 = math.tanh %113 : vector<8x64xf32>
    %115 = vector.extract_strided_slice %112 {offsets = [0, 0], sizes = [8, 64], strides = [1, 1]} : vector<8x256xf32> to vector<8x64xf32>
    %116 = vector.extract_strided_slice %112 {offsets = [0, 64], sizes = [8, 64], strides = [1, 1]} : vector<8x256xf32> to vector<8x64xf32>
    %117 = vector.extract_strided_slice %112 {offsets = [0, 128], sizes = [8, 64], strides = [1, 1]} : vector<8x256xf32> to vector<8x64xf32>
    %118 = arith.mulf %116, %100 : vector<8x64xf32>
    %119 = arith.mulf %115, %114 : vector<8x64xf32>
    %120 = arith.addf %118, %119 : vector<8x64xf32>
    %121 = math.tanh %120 : vector<8x64xf32>
    %122 = arith.mulf %117, %121 : vector<8x64xf32>
    %c6_i32 = arith.constant 6 : i32
    %123 = arith.index_cast %c6_i32 : i32 to index
    %c0_26 = arith.constant 0 : index
    %c0_27 = arith.constant 0 : index
    %124 = vector.load %arg0[%123, %c0_26, %c0_27] : memref<8x8x256xf32, #tpu.memory_space<vmem>>, vector<1x8x256xf32>
    %125 = vector.shape_cast %124 : vector<1x8x256xf32> to vector<8x256xf32>
    %cst_28 = arith.constant dense<0.000000e+00> : vector<8x256xf32>
    %126 = tpu.matmul %122, %0, %cst_28 {dimension_numbers = #tpu.dot_dimension_numbers<[1], [0], [0], [1], [0, 0, 1, 1], [], []>} : vector<8x64xf32>, vector<64x256xf32>, vector<8x256xf32> -> vector<8x256xf32>
    %127 = arith.addf %125, %126 : vector<8x256xf32>
    %128 = arith.negf %127 : vector<8x256xf32>
    %129 = math.exp %128 : vector<8x256xf32>
    %cst_29 = arith.constant 1.000000e+00 : f32
    %130 = vector.broadcast %cst_29 : f32 to vector<8x256xf32>
    %131 = arith.addf %130, %129 : vector<8x256xf32>
    %132 = arith.divf %130, %131 : vector<8x256xf32>
    %133 = vector.extract_strided_slice %127 {offsets = [0, 192], sizes = [8, 64], strides = [1, 1]} : vector<8x256xf32> to vector<8x64xf32>
    %134 = math.tanh %133 : vector<8x64xf32>
    %135 = vector.extract_strided_slice %132 {offsets = [0, 0], sizes = [8, 64], strides = [1, 1]} : vector<8x256xf32> to vector<8x64xf32>
    %136 = vector.extract_strided_slice %132 {offsets = [0, 64], sizes = [8, 64], strides = [1, 1]} : vector<8x256xf32> to vector<8x64xf32>
    %137 = vector.extract_strided_slice %132 {offsets = [0, 128], sizes = [8, 64], strides = [1, 1]} : vector<8x256xf32> to vector<8x64xf32>
    %138 = arith.mulf %136, %120 : vector<8x64xf32>
    %139 = arith.mulf %135, %134 : vector<8x64xf32>
    %140 = arith.addf %138, %139 : vector<8x64xf32>
    %141 = math.tanh %140 : vector<8x64xf32>
    %142 = arith.mulf %137, %141 : vector<8x64xf32>
    %c7_i32 = arith.constant 7 : i32
    %143 = arith.index_cast %c7_i32 : i32 to index
    %c0_30 = arith.constant 0 : index
    %c0_31 = arith.constant 0 : index
    %144 = vector.load %arg0[%143, %c0_30, %c0_31] : memref<8x8x256xf32, #tpu.memory_space<vmem>>, vector<1x8x256xf32>
    %145 = vector.shape_cast %144 : vector<1x8x256xf32> to vector<8x256xf32>
    %cst_32 = arith.constant dense<0.000000e+00> : vector<8x256xf32>
    %146 = tpu.matmul %142, %0, %cst_32 {dimension_numbers = #tpu.dot_dimension_numbers<[1], [0], [0], [1], [0, 0, 1, 1], [], []>} : vector<8x64xf32>, vector<64x256xf32>, vector<8x256xf32> -> vector<8x256xf32>
    %147 = arith.addf %145, %146 : vector<8x256xf32>
    %148 = arith.negf %147 : vector<8x256xf32>
    %149 = math.exp %148 : vector<8x256xf32>
    %cst_33 = arith.constant 1.000000e+00 : f32
    %150 = vector.broadcast %cst_33 : f32 to vector<8x256xf32>
    %151 = arith.addf %150, %149 : vector<8x256xf32>
    %152 = arith.divf %150, %151 : vector<8x256xf32>
    %153 = vector.extract_strided_slice %147 {offsets = [0, 192], sizes = [8, 64], strides = [1, 1]} : vector<8x256xf32> to vector<8x64xf32>
    %154 = math.tanh %153 : vector<8x64xf32>
    %155 = vector.extract_strided_slice %152 {offsets = [0, 0], sizes = [8, 64], strides = [1, 1]} : vector<8x256xf32> to vector<8x64xf32>
    %156 = vector.extract_strided_slice %152 {offsets = [0, 64], sizes = [8, 64], strides = [1, 1]} : vector<8x256xf32> to vector<8x64xf32>
    %157 = vector.extract_strided_slice %152 {offsets = [0, 128], sizes = [8, 64], strides = [1, 1]} : vector<8x256xf32> to vector<8x64xf32>
    %158 = arith.mulf %156, %140 : vector<8x64xf32>
    %159 = arith.mulf %155, %154 : vector<8x64xf32>
    %160 = arith.addf %158, %159 : vector<8x64xf32>
    %161 = math.tanh %160 : vector<8x64xf32>
    %162 = arith.mulf %157, %161 : vector<8x64xf32>
    %c8_i32 = arith.constant 8 : i32
    %c0_34 = arith.constant 0 : index
    %c0_35 = arith.constant 0 : index
    %163 = vector.load %arg2[%c0_34, %c0_35] : memref<64x128xf32, #tpu.memory_space<vmem>>, vector<64x128xf32>
    %cst_36 = arith.constant dense<0.000000e+00> : vector<8x128xf32>
    %164 = tpu.matmul %162, %163, %cst_36 {dimension_numbers = #tpu.dot_dimension_numbers<[1], [0], [0], [1], [0, 0, 1, 1], [], []>} : vector<8x64xf32>, vector<64x128xf32>, vector<8x128xf32> -> vector<8x128xf32>
    %c0_37 = arith.constant 0 : index
    %c0_38 = arith.constant 0 : index
    %165 = vector.load %arg3[%c0_37, %c0_38] : memref<1x128xf32, #tpu.memory_space<vmem>>, vector<1x128xf32>
    %166 = vector.broadcast %165 : vector<1x128xf32> to vector<8x128xf32>
    %167 = arith.addf %164, %166 : vector<8x128xf32>
    %c0_39 = arith.constant 0 : index
    %c0_40 = arith.constant 0 : index
    %168 = vector.load %arg4[%c0_39, %c0_40] : memref<8x128xf32, #tpu.memory_space<vmem>>, vector<8x128xf32>
    tpu.vector_store %arg4[%c0_39, %c0_40], %167 {strides = array<i32>} : memref<8x128xf32, #tpu.memory_space<vmem>>, vector<8x128xf32>,
    return
  }
}

</mosaic_0001>

<bundles_post_ra>
// kernel: lstm_classifier_forward.1
= control target key start
LH: loop header
LB: loop body
LE: loop exit
PB: predicated region body
PF: predicated region fallthrough
CT: control target
= control target key end

     0   :  { %v1305_v3 = vmov 0.0   ;;  %s1306_s22 = smov 64   ;;  %vm35_vm0 = vcmask 523264   ;;  %vm1308_vm1 = vmmov 0   ;;  %s1582_s1 = inlined_call_operand.vmem [shape: f32[64,256], index: 1, kind: input, shape index: {}]   ;;  %s1583_s0 = inlined_call_operand.vmem [shape: f32[8,8,256], index: 0, kind: input, shape index: {}]   ;;  %s1584_s2 = inlined_call_operand.vmem [shape: f32[64,128], index: 2, kind: input, shape index: {}]   ;;  %s1585_s3 = inlined_call_operand.vmem [shape: f32[1,128], index: 3, kind: input, shape index: {}]   ;;  %s1586_s4 = inlined_call_operand.vmem [shape: f32[8,128], index: 4, kind: output, shape index: {}]  }
   0x1   :  { %v18_v0 = vld [vmem:[%s1582_s1 + $0x8] sm:$0xff]  ;;  %v20_v1 = vld [vmem:[%s1582_s1 + $0x18] sm:$0xff]  ;;  %v17_v2 = vld [vmem:[%s1582_s1] sm:$0xff]  ;;  %103 = vmatprep.mubr.f32.mxu0 %v1305_v3  ;;  %212 = vmatprep.mubr.f32.mxu1 %v1305_v3 }
   0x2   :  { %v1345_v4 = vpack.c.bf16 %v20_v1, %v18_v0  ;;  %v19_v5 = vld [vmem:[%s1582_s1 + $0x10] sm:$0xff]  ;;  %v22_v6 = vld [vmem:[%s1582_s1 + $0x28] sm:$0xff]  ;;  %v24_v7 = vld [vmem:[%s1582_s1 + $0x38] sm:$0xff] }
   0x3   :  { %v1356_v8 = vpack.c.bf16 %v19_v5, %v17_v2  ;;  %v1358_v9 = vpack.c.bf16 %v24_v7, %v22_v6  ;;  %v21_v10 = vld [vmem:[%s1582_s1 + $0x20] sm:$0xff]  ;;  %v23_v11 = vld [vmem:[%s1582_s1 + $0x30] sm:$0xff]  ;;  %v26_v12 = vld [vmem:[%s1582_s1 + $0x48] sm:$0xff] }
   0x4   :  { %1066 = vmatprep.subr.bf16.mxu0 %v1345_v4  ;;  %v28_v13 = vld [vmem:[%s1582_s1 + $0x58] sm:$0xff]  ;;  %1082 = vmatprep.subr.bf16.mxu1 %v1345_v4  ;;  %v1375_v14 = vpack.c.bf16 %v23_v11, %v21_v10  ;;  %v25_v16 = vld [vmem:[%s1582_s1 + $0x40] sm:$0xff]  ;;  %v27_v17 = vld [vmem:[%s1582_s1 + $0x50] sm:$0xff] }
   0x5   :  { %1068 = vmatpush1.bf16.msra.mxu0 %v1356_v8  ;;  %1084 = vmatpush1.bf16.msra.mxu1 %v1356_v8  ;;  %v1379_v15 = vpack.c.bf16 %v28_v13, %v26_v12  ;;  %v30_v18 = vld [vmem:[%s1582_s1 + $0x68] sm:$0xff]  ;;  %v32_v19 = vld [vmem:[%s1582_s1 + $0x78] sm:$0xff]  ;;  %v1395_v20 = vpack.c.bf16 %v27_v17, %v25_v16  ;;  %v29_v22 = vld [vmem:[%s1582_s1 + $0x60] sm:$0xff] }
   0x6   :  { %1070 = vmatprep.subr.bf16.mxu0 %v1358_v9  ;;  %1086 = vmatprep.subr.bf16.mxu1 %v1358_v9  ;;  %v1399_v21 = vpack.c.bf16 %v32_v19, %v30_v18  ;;  %v31_v23 = vld [vmem:[%s1582_s1 + $0x70] sm:$0xff]  ;;  %v34_v25 = vld [vmem:[%s1583_s0 + $0x8] sm:$0xff]  ;;  %v33_v30 = vld [vmem:[%s1583_s0] sm:$0xff] }
   0x7   :  { %v1409_v24 = vpack.c.bf16 %v31_v23, %v29_v22  ;;  %v1001_v48 = vld [vmem:[%s1583_s0 + $0x18] sm:$0xff]  ;;  %v1000_v53 = vld [vmem:[%s1583_s0 + $0x10] sm:$0xff]  ;;  %v1006_v11 = vld [vmem:[%s1583_s0 + $0x28] sm:$0xff] }
   0x8   :  { %v1005_v18 = vld [vmem:[%s1583_s0 + $0x20] sm:$0xff] }
   0x9   :  { %1072 = vmatpush1.bf16.msra.mxu0 %v1375_v14  ;;  %1088 = vmatpush1.bf16.msra.mxu1 %v1375_v14 }
   0xa   :  { %1074 = vmatprep.subr.bf16.mxu0 %v1379_v15  ;;  %1090 = vmatprep.subr.bf16.mxu1 %v1379_v15 }
   0xd   :  { %1076 = vmatpush1.bf16.msra.mxu0 %v1395_v20  ;;  %1092 = vmatpush1.bf16.msra.mxu1 %v1395_v20 }
   0xe   :  { %1078 = vmatprep.subr.bf16.mxu0 %v1399_v21  ;;  %1094 = vmatprep.subr.bf16.mxu1 %v1399_v21 }
  0x11   :  { %1080 = vmatpush1.bf16.msra.mxu0 %v1409_v24  ;;  %1096 = vmatpush1.bf16.msra.mxu1 %v1409_v24 }
  0x12   :  { %1098 = vmatprep.subr.bf16.mxu0 %v1345_v4  ;;  %1114 = vmatprep.subr.bf16.mxu1 %v1345_v4 }
  0x14   :  { %104 = vmatmul.mubr.f32.vlgmr.msra.gmra.mrb[0].mxu0 %v1305_v3 }
  0x15   :  { %1100 = vmatpush1.bf16.msra.mxu0 %v1356_v8  ;;  %321 = vmatprep.mubr.f32.mxu0 %v1305_v3 }
  0x16   :  { %1102 = vmatprep.subr.bf16.mxu0 %v1358_v9 }
  0x19   :  { %1104 = vmatpush1.bf16.msra.mxu0 %v1375_v14 }
  0x1a   :  { %1106 = vmatprep.subr.bf16.mxu0 %v1379_v15 }
  0x1d   :  { %1108 = vmatpush1.bf16.msra.mxu0 %v1395_v20 }
  0x1e   :  { %1110 = vmatprep.subr.bf16.mxu0 %v1399_v21 }
  0x21   :  { %1112 = vmatpush1.bf16.msra.mxu0 %v1409_v24 }
  0x22   :  { %1130 = vmatprep.subr.bf16.mxu0 %v1345_v4 }
  0xe7   :  { %v105_v26 = vpop.f32.mrb[0].mxu0 }
  0xe8   :  { %v107_v27 = vpop.f32.mrb[1].mxu0  ;;  %v110_v31 = vadd.f32 %v105_v26, %v33_v30 }
  0xe9   :  { %v111_v28 = vadd.f32 %v107_v27, %v34_v25 }
  0xea   :  { %v998_v32 = vmul.f32 -1.442695, %v110_v31 }
  0xeb   :  { %1209 = vtanh.f32 %v111_v28  ;;  %v999_v42 = vmul.f32 -1.442695, %v111_v28 }
  0xec   :  { %1211 = vpow2.f32 %v998_v32 }
  0xf5   :  { %v1210_v29 = vpop.eup %1209 }
  0xf6   :  { %127 = vrot.lane.b32.xlu0 %v1210_v29, %s1306_s22  ;;  %v1212_v33 = vpop.eup %1211 }
  0xf7   :  { %v118_v34 = vadd.f32 1.0, %v1212_v33 }
  0xf9   :  { %1213 = vrcp.f32 %v118_v34 }
 0x103   :  { %v1214_v35 = vpop.eup %1213 }
 0x104   :  { %v125_v38 = vmul.f32 0.0, %v1214_v35 }
 0x168   :  { %v128_v36 = vpop.permute.xlu0 %127 }
 0x169   :  { %v130_v37 = vmul.f32 %v1214_v35, %v128_v36 }
 0x16b   :  { %132 = vrot.lane.b32.xlu0 %v130_v37, %s1306_s22 }
 0x1dd   :  { %v133_v39 = vpop.permute.xlu0 %132 }
 0x1de   :  { %v135_v40 = vadd.f32 %v133_v39, %v125_v38  ;;  %v1011_v39 = vld [vmem:[%s1583_s0 + $0x38] sm:$0xff] }
 0x1e0   :  { %1215 = vtanh.f32 %v135_v40 }
 0x1e1   :  { %1217 = vpow2.f32 %v999_v42 }
 0x1ea   :  { %v1216_v41 = vpop.eup %1215 }
 0x1eb   :  { %138 = vrot.lane.b32.xlu1 %v1216_v41, %s1306_s22  ;;  %v1218_v43 = vpop.eup %1217 }
 0x1ec   :  { %v119_v44 = vadd.f32 1.0, %v1218_v43 }
 0x1ee   :  { %1219 = vrcp.f32 %v119_v44  ;;  %v1010_v44 = vld [vmem:[%s1583_s0 + $0x30] sm:$0xff] }
 0x1f8   :  { %v1220_v45 = vpop.eup %1219 }
 0x25d   :  { %v139_v46 = vpop.permute.xlu1 %138 }
 0x25e   :  { %v141_v47 = vmul.f32 %v1220_v45, %v139_v46 }
 0x260   :  { %1002 = vmatmul.mubr.msk.f32.vlgmr.msra.gmra.mrb[0].mxu1 %vm35_vm0, %v141_v47 }
 0x261   :  { %1116 = vmatpush1.bf16.msra.mxu1 %v1356_v8  ;;  %430 = vmatprep.mubr.f32.mxu1 %v1305_v3 }
 0x262   :  { %1118 = vmatprep.subr.bf16.mxu1 %v1358_v9 }
 0x265   :  { %1120 = vmatpush1.bf16.msra.mxu1 %v1375_v14 }
 0x266   :  { %1122 = vmatprep.subr.bf16.mxu1 %v1379_v15 }
 0x269   :  { %1124 = vmatpush1.bf16.msra.mxu1 %v1395_v20 }
 0x26a   :  { %1126 = vmatprep.subr.bf16.mxu1 %v1399_v21 }
 0x26d   :  { %1128 = vmatpush1.bf16.msra.mxu1 %v1409_v24 }
 0x26e   :  { %1146 = vmatprep.subr.bf16.mxu1 %v1345_v4 }
 0x333   :  { %v214_v49 = vpop.f32.mrb[0].mxu1 }
 0x334   :  { %v216_v50 = vpop.f32.mrb[1].mxu1  ;;  %v219_v54 = vadd.f32 %v1000_v53, %v214_v49 }
 0x335   :  { %v220_v51 = vadd.f32 %v1001_v48, %v216_v50 }
 0x336   :  { %v1003_v55 = vmul.f32 -1.442695, %v219_v54 }
 0x337   :  { %1221 = vtanh.f32 %v220_v51  ;;  %v1004_v1 = vmul.f32 -1.442695, %v220_v51 }
 0x338   :  { %1223 = vpow2.f32 %v1003_v55 }
 0x341   :  { %v1222_v52 = vpop.eup %1221 }
 0x342   :  { %236 = vrot.lane.b32.xlu1 %v1222_v52, %s1306_s22  ;;  %v1224_v56 = vpop.eup %1223 }
 0x343   :  { %v227_v57 = vadd.f32 1.0, %v1224_v56 }
 0x345   :  { %1225 = vrcp.f32 %v227_v57 }
 0x34f   :  { %v1226_v58 = vpop.eup %1225 }
 0x350   :  { %v234_v61 = vmul.f32 %v1226_v58, %v135_v40 }
 0x3b4   :  { %v237_v59 = vpop.permute.xlu1 %236 }
 0x3b5   :  { %v239_v60 = vmul.f32 %v1226_v58, %v237_v59 }
 0x3b7   :  { %241 = vrot.lane.b32.xlu0 %v239_v60, %s1306_s22 }
 0x429   :  { %v242_v62 = vpop.permute.xlu0 %241 }
 0x42a   :  { %v244_v63 = vadd.f32 %v242_v62, %v234_v61  ;;  %v1016_v61 = vld [vmem:[%s1583_s0 + $0x48] sm:$0xff] }
 0x42c   :  { %1227 = vtanh.f32 %v244_v63 }
 0x42d   :  { %1229 = vpow2.f32 %v1004_v1 }
 0x436   :  { %v1228_v0 = vpop.eup %1227 }
 0x437   :  { %247 = vrot.lane.b32.xlu1 %v1228_v0, %s1306_s22  ;;  %v1230_v2 = vpop.eup %1229 }
 0x438   :  { %v228_v5 = vadd.f32 1.0, %v1230_v2  ;;  %v1015_v2 = vld [vmem:[%s1583_s0 + $0x40] sm:$0xff] }
 0x43a   :  { %1231 = vrcp.f32 %v228_v5 }
 0x444   :  { %v1232_v6 = vpop.eup %1231 }
 0x4a9   :  { %v248_v7 = vpop.permute.xlu1 %247 }
 0x4aa   :  { %v250_v10 = vmul.f32 %v1232_v6, %v248_v7 }
 0x4ac   :  { %1007 = vmatmul.mubr.msk.f32.vlgmr.msra.gmra.mrb[2].mxu0 %vm35_vm0, %v250_v10 }
 0x4ad   :  { %1132 = vmatpush1.bf16.msra.mxu0 %v1356_v8  ;;  %539 = vmatprep.mubr.f32.mxu0 %v1305_v3 }
 0x4ae   :  { %1134 = vmatprep.subr.bf16.mxu0 %v1358_v9 }
 0x4b1   :  { %1136 = vmatpush1.bf16.msra.mxu0 %v1375_v14 }
 0x4b2   :  { %1138 = vmatprep.subr.bf16.mxu0 %v1379_v15 }
 0x4b5   :  { %1140 = vmatpush1.bf16.msra.mxu0 %v1395_v20 }
 0x4b6   :  { %1142 = vmatprep.subr.bf16.mxu0 %v1399_v21 }
 0x4b9   :  { %1144 = vmatpush1.bf16.msra.mxu0 %v1409_v24 }
 0x4ba   :  { %1162 = vmatprep.subr.bf16.mxu0 %v1345_v4 }
 0x57f   :  { %v323_v12 = vpop.f32.mrb[2].mxu0 }
 0x580   :  { %v325_v13 = vpop.f32.mrb[3].mxu0  ;;  %v328_v19 = vadd.f32 %v1005_v18, %v323_v12 }
 0x581   :  { %v329_v16 = vadd.f32 %v1006_v11, %v325_v13 }
 0x582   :  { %v1008_v22 = vmul.f32 -1.442695, %v328_v19 }
 0x583   :  { %1233 = vtanh.f32 %v329_v16  ;;  %v1009_v33 = vmul.f32 -1.442695, %v329_v16 }
 0x584   :  { %1235 = vpow2.f32 %v1008_v22 }
 0x58d   :  { %v1234_v17 = vpop.eup %1233 }
 0x58e   :  { %345 = vrot.lane.b32.xlu0 %v1234_v17, %s1306_s22  ;;  %v1236_v23 = vpop.eup %1235 }
 0x58f   :  { %v336_v25 = vadd.f32 1.0, %v1236_v23 }
 0x591   :  { %1237 = vrcp.f32 %v336_v25 }
 0x59b   :  { %v1238_v26 = vpop.eup %1237 }
 0x59c   :  { %v343_v29 = vmul.f32 %v1238_v26, %v244_v63 }
 0x600   :  { %v346_v27 = vpop.permute.xlu0 %345 }
 0x601   :  { %v348_v28 = vmul.f32 %v1238_v26, %v346_v27 }
 0x603   :  { %350 = vrot.lane.b32.xlu1 %v348_v28, %s1306_s22 }
 0x675   :  { %v351_v30 = vpop.permute.xlu1 %350 }
 0x676   :  { %v353_v31 = vadd.f32 %v351_v30, %v343_v29  ;;  %v1021_v29 = vld [vmem:[%s1583_s0 + $0x58] sm:$0xff] }
 0x678   :  { %1239 = vtanh.f32 %v353_v31 }
 0x679   :  { %1241 = vpow2.f32 %v1009_v33 }
 0x682   :  { %v1240_v32 = vpop.eup %1239 }
 0x683   :  { %356 = vrot.lane.b32.xlu0 %v1240_v32, %s1306_s22  ;;  %v1242_v34 = vpop.eup %1241 }
 0x684   :  { %v337_v35 = vadd.f32 1.0, %v1242_v34 }
 0x686   :  { %1243 = vrcp.f32 %v337_v35 }
 0x690   :  { %v1244_v36 = vpop.eup %1243 }
 0x6f5   :  { %v357_v37 = vpop.permute.xlu0 %356 }
 0x6f6   :  { %v359_v38 = vmul.f32 %v1244_v36, %v357_v37 }
 0x6f8   :  { %1012 = vmatmul.mubr.msk.f32.vlgmr.msra.gmra.mrb[2].mxu1 %vm35_vm0, %v359_v38 }
 0x6f9   :  { %1148 = vmatpush1.bf16.msra.mxu1 %v1356_v8  ;;  %648 = vmatprep.mubr.f32.mxu1 %v1305_v3 }
 0x6fa   :  { %1150 = vmatprep.subr.bf16.mxu1 %v1358_v9 }
 0x6fd   :  { %1152 = vmatpush1.bf16.msra.mxu1 %v1375_v14 }
 0x6fe   :  { %1154 = vmatprep.subr.bf16.mxu1 %v1379_v15 }
 0x701   :  { %1156 = vmatpush1.bf16.msra.mxu1 %v1395_v20 }
 0x702   :  { %1158 = vmatprep.subr.bf16.mxu1 %v1399_v21 }
 0x705   :  { %1160 = vmatpush1.bf16.msra.mxu1 %v1409_v24 }
 0x706   :  { %1178 = vmatprep.subr.bf16.mxu1 %v1345_v4 }
 0x7cb   :  { %v432_v40 = vpop.f32.mrb[2].mxu1 }
 0x7cc   :  { %v434_v41 = vpop.f32.mrb[3].mxu1  ;;  %v437_v45 = vadd.f32 %v1010_v44, %v432_v40 }
 0x7cd   :  { %v438_v42 = vadd.f32 %v1011_v39, %v434_v41 }
 0x7ce   :  { %v1013_v46 = vmul.f32 -1.442695, %v437_v45  ;;  %v1026_v45 = vld [vmem:[%s1583_s0 + $0x68] sm:$0xff] }
 0x7cf   :  { %1245 = vtanh.f32 %v438_v42  ;;  %v1014_v55 = vmul.f32 -1.442695, %v438_v42 }
 0x7d0   :  { %1247 = vpow2.f32 %v1013_v46 }
 0x7d9   :  { %v1246_v43 = vpop.eup %1245 }
 0x7da   :  { %454 = vrot.lane.b32.xlu1 %v1246_v43, %s1306_s22  ;;  %v1248_v47 = vpop.eup %1247 }
 0x7db   :  { %v445_v4 = vadd.f32 1.0, %v1248_v47 }
 0x7dd   :  { %1249 = vrcp.f32 %v445_v4 }
 0x7e7   :  { %v1250_v48 = vpop.eup %1249 }
 0x7e8   :  { %v452_v51 = vmul.f32 %v1250_v48, %v353_v31 }
 0x84c   :  { %v455_v49 = vpop.permute.xlu1 %454 }
 0x84d   :  { %v457_v50 = vmul.f32 %v1250_v48, %v455_v49  ;;  %v1025_v49 = vld [vmem:[%s1583_s0 + $0x60] sm:$0xff] }
 0x84f   :  { %459 = vrot.lane.b32.xlu0 %v457_v50, %s1306_s22 }
 0x8c1   :  { %v460_v52 = vpop.permute.xlu0 %459 }
 0x8c2   :  { %v462_v53 = vadd.f32 %v460_v52, %v452_v51 }
 0x8c4   :  { %1251 = vtanh.f32 %v462_v53 }
 0x8c5   :  { %1253 = vpow2.f32 %v1014_v55 }
 0x8ce   :  { %v1252_v54 = vpop.eup %1251 }
 0x8cf   :  { %465 = vrot.lane.b32.xlu1 %v1252_v54, %s1306_s22  ;;  %v1254_v56 = vpop.eup %1253 }
 0x8d0   :  { %v446_v57 = vadd.f32 1.0, %v1254_v56 }
 0x8d2   :  { %1255 = vrcp.f32 %v446_v57 }
 0x8dc   :  { %v1256_v58 = vpop.eup %1255 }
 0x941   :  { %v466_v59 = vpop.permute.xlu1 %465 }
 0x942   :  { %v468_v60 = vmul.f32 %v1256_v58, %v466_v59 }
 0x944   :  { %1017 = vmatmul.mubr.msk.f32.vlgmr.msra.gmra.mrb[4].mxu0 %vm35_vm0, %v468_v60 }
 0x945   :  { %1164 = vmatpush1.bf16.msra.mxu0 %v1356_v8  ;;  %757 = vmatprep.mubr.f32.mxu0 %v1305_v3 }
 0x946   :  { %1166 = vmatprep.subr.bf16.mxu0 %v1358_v9 }
 0x949   :  { %1168 = vmatpush1.bf16.msra.mxu0 %v1375_v14 }
 0x94a   :  { %1170 = vmatprep.subr.bf16.mxu0 %v1379_v15 }
 0x94d   :  { %1172 = vmatpush1.bf16.msra.mxu0 %v1395_v20 }
 0x94e   :  { %1174 = vmatprep.subr.bf16.mxu0 %v1399_v21 }
 0x951   :  { %1176 = vmatpush1.bf16.msra.mxu0 %v1409_v24 }
 0xa17   :  { %v541_v62 = vpop.f32.mrb[4].mxu0 }
 0xa18   :  { %v543_v63 = vpop.f32.mrb[5].mxu0  ;;  %v546_v5 = vadd.f32 %v1015_v2, %v541_v62 }
 0xa19   :  { %v547_v0 = vadd.f32 %v1016_v61, %v543_v63 }
 0xa1a   :  { %v1018_v6 = vmul.f32 -1.442695, %v546_v5  ;;  %v1031_v5 = vld [vmem:[%s1583_s0 + $0x78] sm:$0xff] }
 0xa1b   :  { %1257 = vtanh.f32 %v547_v0  ;;  %v1019_v22 = vmul.f32 -1.442695, %v547_v0 }
 0xa1c   :  { %1259 = vpow2.f32 %v1018_v6 }
 0xa25   :  { %v1258_v1 = vpop.eup %1257 }
 0xa26   :  { %563 = vrot.lane.b32.xlu0 %v1258_v1, %s1306_s22  ;;  %v1260_v7 = vpop.eup %1259 }
 0xa27   :  { %v554_v10 = vadd.f32 1.0, %v1260_v7 }
 0xa29   :  { %1261 = vrcp.f32 %v554_v10 }
 0xa33   :  { %v1262_v11 = vpop.eup %1261 }
 0xa34   :  { %v561_v16 = vmul.f32 %v1262_v11, %v462_v53 }
 0xa98   :  { %v564_v12 = vpop.permute.xlu0 %563 }
 0xa99   :  { %v566_v13 = vmul.f32 %v1262_v11, %v564_v12  ;;  %v1030_v12 = vld [vmem:[%s1583_s0 + $0x70] sm:$0xff] }
 0xa9b   :  { %568 = vrot.lane.b32.xlu1 %v566_v13, %s1306_s22 }
 0xb0d   :  { %v569_v17 = vpop.permute.xlu1 %568 }
 0xb0e   :  { %v571_v18 = vadd.f32 %v569_v17, %v561_v16 }
 0xb10   :  { %1263 = vtanh.f32 %v571_v18 }
 0xb11   :  { %1265 = vpow2.f32 %v1019_v22 }
 0xb1a   :  { %v1264_v19 = vpop.eup %1263 }
 0xb1b   :  { %574 = vrot.lane.b32.xlu0 %v1264_v19, %s1306_s22  ;;  %v1266_v23 = vpop.eup %1265 }
 0xb1c   :  { %v555_v25 = vadd.f32 1.0, %v1266_v23 }
 0xb1e   :  { %1267 = vrcp.f32 %v555_v25  ;;  %v1307_v25 = vmov 0.0|0.0  }
 0xb1f   :  { %1193 = vmatprep.subr.bf16.mxu0 %v1307_v25 }
 0xb28   :  { %v1268_v26 = vpop.eup %1267 }
 0xb8d   :  { %v575_v27 = vpop.permute.xlu0 %574 }
 0xb8e   :  { %v577_v28 = vmul.f32 %v1268_v26, %v575_v27  ;;  %v905_v26 = vld [vmem:[%s1584_s2] sm:$0xff]  ;;  %v906_v27 = vld [vmem:[%s1584_s2 + $0x8] sm:$0xff] }
 0xb90   :  { %1022 = vmatmul.mubr.msk.f32.vlgmr.msra.gmra.mrb[4].mxu1 %vm35_vm0, %v577_v28  ;;  %v907_v28 = vld [vmem:[%s1584_s2 + $0x10] sm:$0xff] }
 0xb91   :  { %1180 = vmatpush1.bf16.msra.mxu1 %v1356_v8  ;;  %866 = vmatprep.mubr.f32.mxu1 %v1305_v3 }
 0xb92   :  { %1182 = vmatprep.subr.bf16.mxu1 %v1358_v9  ;;  %v1020_v9 = vld [vmem:[%s1583_s0 + $0x50] sm:$0xff] }
 0xb95   :  { %1184 = vmatpush1.bf16.msra.mxu1 %v1375_v14 }
 0xb96   :  { %1186 = vmatprep.subr.bf16.mxu1 %v1379_v15 }
 0xb99   :  { %1188 = vmatpush1.bf16.msra.mxu1 %v1395_v20 }
 0xb9a   :  { %1190 = vmatprep.subr.bf16.mxu1 %v1399_v21 }
 0xb9d   :  { %1192 = vmatpush1.bf16.msra.mxu1 %v1409_v24 }
 0xc63   :  { %v650_v30 = vpop.f32.mrb[4].mxu1 }
 0xc64   :  { %v652_v8 = vpop.f32.mrb[5].mxu1  ;;  %v655_v14 = vadd.f32 %v1020_v9, %v650_v30  ;;  %v908_v30 = vld [vmem:[%s1584_s2 + $0x18] sm:$0xff] }
 0xc65   :  { %v656_v31 = vadd.f32 %v1021_v29, %v652_v8  ;;  %v1194_v29 = vpack.c.bf16 %v906_v27, %v905_v26  ;;  %v1197_v8 = vpack.c.bf16 %v908_v30, %v907_v28 }
 0xc66   :  { %v1023_v15 = vmul.f32 -1.442695, %v655_v14  ;;  %v911_v14 = vld [vmem:[%s1584_s2 + $0x30] sm:$0xff] }
 0xc67   :  { %1269 = vtanh.f32 %v656_v31  ;;  %v1024_v39 = vmul.f32 -1.442695, %v656_v31  ;;  %v909_v31 = vld [vmem:[%s1584_s2 + $0x20] sm:$0xff] }
 0xc68   :  { %1271 = vpow2.f32 %v1023_v15  ;;  %v912_v15 = vld [vmem:[%s1584_s2 + $0x38] sm:$0xff] }
 0xc71   :  { %v1270_v32 = vpop.eup %1269 }
 0xc72   :  { %672 = vrot.lane.b32.xlu1 %v1270_v32, %s1306_s22  ;;  %v1272_v20 = vpop.eup %1271  ;;  %v910_v32 = vld [vmem:[%s1584_s2 + $0x28] sm:$0xff] }
 0xc73   :  { %v663_v21 = vadd.f32 1.0, %v1272_v20  ;;  %v1200_v9 = vpack.c.bf16 %v910_v32, %v909_v31  ;;  %v1203_v20 = vpack.c.bf16 %v912_v15, %v911_v14 }
 0xc75   :  { %1273 = vrcp.f32 %v663_v21 }
 0xc7f   :  { %v1274_v24 = vpop.eup %1273 }
 0xc80   :  { %v670_v35 = vmul.f32 %v1274_v24, %v571_v18 }
 0xce4   :  { %v673_v33 = vpop.permute.xlu1 %672 }
 0xce5   :  { %v675_v34 = vmul.f32 %v1274_v24, %v673_v33 }
 0xce7   :  { %677 = vrot.lane.b32.xlu0 %v675_v34, %s1306_s22 }
 0xd59   :  { %v678_v36 = vpop.permute.xlu0 %677 }
 0xd5a   :  { %v680_v37 = vadd.f32 %v678_v36, %v670_v35 }
 0xd5c   :  { %1275 = vtanh.f32 %v680_v37 }
 0xd5d   :  { %1277 = vpow2.f32 %v1024_v39 }
 0xd66   :  { %v1276_v38 = vpop.eup %1275 }
 0xd67   :  { %683 = vrot.lane.b32.xlu1 %v1276_v38, %s1306_s22  ;;  %v1278_v40 = vpop.eup %1277 }
 0xd68   :  { %v664_v41 = vadd.f32 1.0, %v1278_v40 }
 0xd6a   :  { %1279 = vrcp.f32 %v664_v41  ;;  %v1035_v41 = vld [vmem:[%s1585_s3] ss:$0 sm:$0xff] }
 0xd74   :  { %v1280_v42 = vpop.eup %1279 }
 0xdd9   :  { %v684_v43 = vpop.permute.xlu1 %683 }
 0xdda   :  { %v686_v44 = vmul.f32 %v1280_v42, %v684_v43 }
 0xddc   :  { %1027 = vmatmul.mubr.msk.f32.vlgmr.msra.gmra.mrb[6].mxu0 %vm35_vm0, %v686_v44 }
 0xddd   :  { %1195 = vmatpush3.bf16.msra.mxu0 %v1194_v29  ;;  %1062 = vmatprep.mubr.msk.f32.mxu0 %vm1308_vm1, %v1305_v3 }
 0xdde   :  { %1196 = vmatprep.subr.bf16.mxu0 %v1307_v25 }
 0xde1   :  { %1198 = vmatpush3.bf16.msra.mxu0 %v1197_v8 }
 0xde2   :  { %1199 = vmatprep.subr.bf16.mxu0 %v1307_v25 }
 0xde5   :  { %1201 = vmatpush3.bf16.msra.mxu0 %v1200_v9 }
 0xde6   :  { %1202 = vmatprep.subr.bf16.mxu0 %v1307_v25 }
 0xde9   :  { %1204 = vmatpush3.bf16.msra.mxu0 %v1203_v20 }
 0xeaf   :  { %v759_v46 = vpop.f32.mrb[6].mxu0 }
 0xeb0   :  { %v761_v47 = vpop.f32.mrb[7].mxu0  ;;  %v764_v50 = vadd.f32 %v1025_v49, %v759_v46 }
 0xeb1   :  { %v765_v4 = vadd.f32 %v1026_v45, %v761_v47 }
 0xeb2   :  { %v1028_v51 = vmul.f32 -1.442695, %v764_v50 }
 0xeb3   :  { %1281 = vtanh.f32 %v765_v4  ;;  %v1029_v61 = vmul.f32 -1.442695, %v765_v4 }
 0xeb4   :  { %1283 = vpow2.f32 %v1028_v51 }
 0xebd   :  { %v1282_v48 = vpop.eup %1281 }
 0xebe   :  { %781 = vrot.lane.b32.xlu0 %v1282_v48, %s1306_s22  ;;  %v1284_v52 = vpop.eup %1283 }
 0xebf   :  { %v772_v53 = vadd.f32 1.0, %v1284_v52 }
 0xec1   :  { %1285 = vrcp.f32 %v772_v53 }
 0xecb   :  { %v1286_v54 = vpop.eup %1285 }
 0xecc   :  { %v779_v57 = vmul.f32 %v1286_v54, %v680_v37 }
 0xf30   :  { %v782_v55 = vpop.permute.xlu0 %781 }
 0xf31   :  { %v784_v56 = vmul.f32 %v1286_v54, %v782_v55 }
 0xf33   :  { %786 = vrot.lane.b32.xlu1 %v784_v56, %s1306_s22 }
 0xfa5   :  { %v787_v58 = vpop.permute.xlu1 %786 }
 0xfa6   :  { %v789_v59 = vadd.f32 %v787_v58, %v779_v57 }
 0xfa8   :  { %1287 = vtanh.f32 %v789_v59 }
 0xfa9   :  { %1289 = vpow2.f32 %v1029_v61 }
 0xfb2   :  { %v1288_v60 = vpop.eup %1287 }
 0xfb3   :  { %792 = vrot.lane.b32.xlu0 %v1288_v60, %s1306_s22  ;;  %v1290_v62 = vpop.eup %1289 }
 0xfb4   :  { %v773_v63 = vadd.f32 1.0, %v1290_v62 }
 0xfb6   :  { %1291 = vrcp.f32 %v773_v63 }
 0xfc0   :  { %v1292_v0 = vpop.eup %1291 }
0x1025   :  { %v793_v1 = vpop.permute.xlu0 %792 }
0x1026   :  { %v795_v2 = vmul.f32 %v1292_v0, %v793_v1 }
0x1028   :  { %1032 = vmatmul.mubr.msk.f32.vlgmr.msra.gmra.mrb[6].mxu1 %vm35_vm0, %v795_v2 }
0x10fb   :  { %v868_v6 = vpop.f32.mrb[6].mxu1 }
0x10fc   :  { %v870_v7 = vpop.f32.mrb[7].mxu1  ;;  %v873_v13 = vadd.f32 %v1030_v12, %v868_v6 }
0x10fd   :  { %v874_v10 = vadd.f32 %v1031_v5, %v870_v7 }
0x10fe   :  { %v1033_v16 = vmul.f32 -1.442695, %v873_v13 }
0x10ff   :  { %1293 = vtanh.f32 %v874_v10  ;;  %v1034_v35 = vmul.f32 -1.442695, %v874_v10 }
0x1100   :  { %1295 = vpow2.f32 %v1033_v16 }
0x1109   :  { %v1294_v11 = vpop.eup %1293 }
0x110a   :  { %890 = vrot.lane.b32.xlu1 %v1294_v11, %s1306_s22  ;;  %v1296_v17 = vpop.eup %1295 }
0x110b   :  { %v881_v18 = vadd.f32 1.0, %v1296_v17 }
0x110d   :  { %1297 = vrcp.f32 %v881_v18 }
0x1117   :  { %v1298_v19 = vpop.eup %1297 }
0x1118   :  { %v888_v21 = vmul.f32 %v1298_v19, %v789_v59 }
0x117c   :  { %v891_v22 = vpop.permute.xlu1 %890 }
0x117d   :  { %v893_v23 = vmul.f32 %v1298_v19, %v891_v22 }
0x117f   :  { %895 = vrot.lane.b32.xlu0 %v893_v23, %s1306_s22 }
0x11f1   :  { %v896_v24 = vpop.permute.xlu0 %895 }
0x11f2   :  { %v898_v33 = vadd.f32 %v896_v24, %v888_v21 }
0x11f4   :  { %1299 = vtanh.f32 %v898_v33 }
0x11f5   :  { %1301 = vpow2.f32 %v1034_v35 }
0x11fe   :  { %v1300_v34 = vpop.eup %1299 }
0x11ff   :  { %901 = vrot.lane.b32.xlu1 %v1300_v34, %s1306_s22  ;;  %v1302_v36 = vpop.eup %1301 }
0x1200   :  { %v882_v37 = vadd.f32 1.0, %v1302_v36 }
0x1202   :  { %1303 = vrcp.f32 %v882_v37 }
0x120c   :  { %v1304_v38 = vpop.eup %1303 }
0x1271   :  { %v902_v39 = vpop.permute.xlu1 %901 }
0x1272   :  { %v904_v40 = vmul.f32 %v1304_v38, %v902_v39 }
0x1274   :  { %1063 = vmatmul.mubr.msk.f32.vlgmr.msra.gmra.mrb[8].mxu0 %vm35_vm0, %v904_v40 }
0x1347   :  { %v989_v42 = vpop.f32.mrb[8].mxu0 }
0x1348   :  { %v990_v3 = vadd.f32 %v1035_v41, %v989_v42  ;;  %v1064_v43 = vpop.f32.mrb[9].mxu0 }
0x134a   :  { %993 = vst [vmem:[%s1586_s4] sm:$0xff] %v990_v3 }

</bundles_post_ra>
